<compile_context>
chip_gen: v7x
topology: tpu7x:2x2x1
jax: 0.10.0
libtpu: 0.0.40
codegen_flags: <defaults>
</compile_context>

<pallas_src>
import functools

import jax
import jax.numpy as jnp
from jax.experimental import pallas as pl
from jax.experimental.pallas import tpu as pltpu


def _round_up(x, m):
    return ((x + m - 1) // m) * m


def _vmem_capacity_bytes():
    """Physical VMEM per TensorCore (128 MiB on v5e/v6e, 64 MiB on v7x)."""
    try:
        info = pltpu.get_tpu_info()
        cap = getattr(info, "vmem_capacity_bytes", None)
        if cap:
            return int(cap)
    except Exception:
        pass
    return 128 * 1024 * 1024


def _ffn_kernel(x_ref, w13_ref, b13_ref, w2_ref, b2_ref, o_ref, acc_ref, *, tn):
    # Grid: (i over token tiles ["parallel"], j over hidden tiles ["arbitrary"]).
    j = pl.program_id(1)

    x = x_ref[...]                                            # (tm, D) bf16

    # Fused gate+up projection against the interleaved [W1_j | W3_j] slab:
    # one MXU matmul -> (tm, 2*tn) f32, then a lane split at tn.
    h = jnp.dot(x, w13_ref[...],
                preferred_element_type=jnp.float32) + b13_ref[...]
    h1 = h[:, :tn]                                            # gate branch
    h3 = h[:, tn:]                                            # up branch

    # SwiGLU: silu(h1) * h3  (sigmoid lowers to the EUP slot -> hidden under MXU)
    g = (h1 * jax.nn.sigmoid(h1)) * h3                        # (tm, tn) f32

    # Partial down-projection for this hidden slab.
    partial = jnp.dot(g.astype(w2_ref.dtype), w2_ref[...],
                      preferred_element_type=jnp.float32)     # (tm, D) f32

    # First hidden tile: direct assign (no (tm, D) zero-store + reload).
    @pl.when(j == 0)
    def _():
        acc_ref[...] = partial

    @pl.when(j != 0)
    def _():
        acc_ref[...] += partial

    @pl.when(j == pl.num_programs(1) - 1)
    def _():
        o_ref[...] = (acc_ref[...] + b2_ref[...]).astype(o_ref.dtype)


@functools.partial(jax.jit,
                   static_argnames=("tm", "tn", "out_dtype", "vmem_limit"))
def _ffn_pallas(x, w13, b13, w2, b2, *, tm, tn, out_dtype, vmem_limit):
    M, D = x.shape
    H = w13.shape[1] // 2
    grid = (M // tm, H // tn)
    n_i = M // tm

    w_isz = jnp.dtype(w13.dtype).itemsize
    x_isz = jnp.dtype(x.dtype).itemsize
    o_isz = jnp.dtype(out_dtype).itemsize
    b_isz = jnp.dtype(b13.dtype).itemsize
    cost = pl.CostEstimate(
        flops=6 * M * D * H,
        transcendentals=M * H,
        bytes_accessed=(M * D * x_isz                      # x in
                        + M * D * o_isz                    # y out
                        + n_i * 3 * D * H * w_isz          # W1,W3,W2 per i tile
                        + n_i * 2 * H * b_isz              # b1,b3 per i tile
                        + D * b_isz),                      # b2
    )

    return pl.pallas_call(
        functools.partial(_ffn_kernel, tn=tn),
        out_shape=jax.ShapeDtypeStruct((M, D), jnp.dtype(out_dtype)),
        grid_spec=pltpu.PrefetchScalarGridSpec(
            num_scalar_prefetch=0,
            grid=grid,
            in_specs=[
                pl.BlockSpec((tm, D), lambda i, j: (i, 0)),       # x tile
                pl.BlockSpec((D, 2 * tn), lambda i, j: (0, j)),   # [W1|W3] slab
                pl.BlockSpec((1, 2 * tn), lambda i, j: (0, j)),   # [b1|b3] slab
                pl.BlockSpec((tn, D), lambda i, j: (j, 0)),       # W2 slab
                pl.BlockSpec((1, D), lambda i, j: (0, 0)),        # b2 (constant)
            ],
            out_specs=pl.BlockSpec((tm, D), lambda i, j: (i, 0)),
            scratch_shapes=[pltpu.VMEM((tm, D), jnp.float32)],
        ),
        compiler_params=pltpu.CompilerParams(
            dimension_semantics=("parallel", "arbitrary"),
            vmem_limit_bytes=vmem_limit,
        ),
        cost_estimate=cost,
    )(x, w13, b13, w2, b2)


def feed_forward_llama(x2d, w1, b1, w3, b3, w2, b2,
                       *, tm=None, tn=None, compute_dtype=jnp.bfloat16):
    """x2d: [M, D] flattened tokens. w1/w3: [D, H] (transposed torch weights),
    b1/b3: [1, H], w2: [H, D], b2: [1, D]."""
    M, D = x2d.shape
    H = w1.shape[1]
    out_dtype = jnp.dtype(x2d.dtype)

    # Generation-aware budgets: 128 MiB VMEM on v5e/v6e, 64 MiB on v7x.
    vmem_cap = _vmem_capacity_bytes()
    big_vmem = vmem_cap > 96 * 1024 * 1024
    vmem_limit = int(vmem_cap * 0.85)          # leave compiler headroom

    # Hidden tile (does not affect arithmetic intensity, only VMEM).
    if tn is None:
        tn = 512 if big_vmem else 256
    tn = min(tn, H)
    while H % tn != 0:
        tn //= 2
    tn = max(tn, 1)

    # Token tile: weights are re-streamed per token tile, so AI ~ 2*tm/itemsize.
    # Target 1024 on v5e/v6e, 512 on v7x; walk down so ragged-M padding waste
    # stays <= ~25%; keep a multiple of 16 for bf16 sublane packing.
    if tm is None:
        tm = 1024 if big_vmem else 512
    tm = max(16, min(tm, _round_up(M, 16)))
    tm = _round_up(tm, 16)
    while tm > 16 and (_round_up(M, tm) - M) * 4 > M:
        tm //= 2
    tm = max(16, _round_up(tm, 16))

    m_pad = _round_up(M, tm)
    if m_pad != M:
        x2d = jnp.pad(x2d, ((0, m_pad - M), (0, 0)))

    # Interleave W1/W3 (and b1/b3) per hidden tile so each grid step reads one
    # contiguous (D, 2*tn) gate+up slab.  In a real model, pack once at init.
    nt = H // tn
    w13 = jnp.stack([w1.reshape(D, nt, tn), w3.reshape(D, nt, tn)],
                    axis=2).reshape(D, 2 * H)
    b13 = jnp.stack([b1.reshape(1, nt, tn), b3.reshape(1, nt, tn)],
                    axis=2).reshape(1, 2 * H)

    # bf16 matmul operands (f32 accumulation in-kernel); biases stay f32.
    xc = x2d.astype(compute_dtype)
    w13c = w13.astype(compute_dtype)
    w2c = w2.astype(compute_dtype)
    b13c = b13.astype(jnp.float32)
    b2c = b2.astype(jnp.float32)

    out = _ffn_pallas(xc, w13c, b13c, w2c, b2c,
                      tm=tm, tn=tn, out_dtype=out_dtype.name,
                      vmem_limit=vmem_limit)
    return out[:M]


def _reference(x, w1, b1, w3, b3, w2, b2):
    h1 = x @ w1 + b1
    h3 = x @ w3 + b3
    g = (h1 * jax.nn.sigmoid(h1)) * h3
    return g @ w2 + b2


if __name__ == "__main__":
    # Small, deterministic problem: batch=2, seq=8, d_model=32 -> hidden=128.
    batch, seq, d_model = 2, 8, 32
    hidden = 4 * d_model

    key = jax.random.PRNGKey(0)
    kx, k1, kb1, k3, kb3, k2, kb2 = jax.random.split(key, 7)

    x = jax.random.normal(kx, (batch, seq, d_model), dtype=jnp.float32)

    # Parameters laid out as (in, out) — i.e. transposed torch.nn.Linear weight.
    scale1 = 1.0 / (d_model ** 0.5)
    scale2 = 1.0 / (hidden ** 0.5)
    w1 = jax.random.normal(k1, (d_model, hidden), dtype=jnp.float32) * scale1
    b1 = jax.random.normal(kb1, (1, hidden), dtype=jnp.float32) * 0.01
    w3 = jax.random.normal(k3, (d_model, hidden), dtype=jnp.float32) * scale1
    b3 = jax.random.normal(kb3, (1, hidden), dtype=jnp.float32) * 0.01
    w2 = jax.random.normal(k2, (hidden, d_model), dtype=jnp.float32) * scale2
    b2 = jax.random.normal(kb2, (1, d_model), dtype=jnp.float32) * 0.01

    # Flatten tokens, run kernel, restore shape.
    x2d = x.reshape(batch * seq, d_model)
    y2d = feed_forward_llama(x2d, w1, b1, w3, b3, w2, b2)
    y = y2d.reshape(batch, seq, d_model)
    jax.block_until_ready(y)

    # Correctness vs f32 reference of the PyTorch forward (kernel matmuls are
    # bf16 with f32 accumulation -> loosened tolerance).
    y_ref = _reference(x2d, w1, b1, w3, b3, w2, b2).reshape(batch, seq, d_model)
    assert jnp.allclose(y, y_ref, atol=3e-2, rtol=3e-2), "mismatch vs reference"

    print("KERNEL_OK")
</pallas_src>

<mosaic_0001>
module attributes {stable_mosaic.version = 11 : i64} {
  func.func @_ffn_kernel(%arg0: i32, %arg1: i32, %arg2: memref<16x32xbf16, #tpu.memory_space<vmem>>, %arg3: memref<32x256xbf16, #tpu.memory_space<vmem>>, %arg4: memref<1x256xf32, #tpu.memory_space<vmem>>, %arg5: memref<128x32xbf16, #tpu.memory_space<vmem>>, %arg6: memref<1x32xf32, #tpu.memory_space<vmem>>, %arg7: memref<16x32xf32, #tpu.memory_space<vmem>>, %arg8: memref<16x32xf32, #tpu.memory_space<vmem>>) attributes {dimension_semantics = [#tpu.dimension_semantics<parallel>, #tpu.dimension_semantics<arbitrary>], iteration_bounds = array<i64: 1, 1>, scalar_prefetch = 0 : i64, scratch_operands = 1 : i64, tpu.core_type = #tpu.core_type<tc>, window_params = [{transform_indices = @transform_0, window_bounds = array<i64: 16, 32>}, {transform_indices = @transform_1, window_bounds = array<i64: 32, 256>}, {transform_indices = @transform_2, window_bounds = array<i64: 1, 256>}, {transform_indices = @transform_3, window_bounds = array<i64: 128, 32>}, {pipeline_mode = #tpu.pipeline_mode<synchronous>, transform_indices = @transform_4, window_bounds = array<i64: 1, 32>}, {transform_indices = @transform_5, window_bounds = array<i64: 16, 32>}]} {
    %c0 = arith.constant 0 : index
    %c0_0 = arith.constant 0 : index
    %0 = vector.load %arg2[%c0, %c0_0] : memref<16x32xbf16, #tpu.memory_space<vmem>>, vector<16x32xbf16>
    %c0_1 = arith.constant 0 : index
    %c0_2 = arith.constant 0 : index
    %1 = vector.load %arg3[%c0_1, %c0_2] : memref<32x256xbf16, #tpu.memory_space<vmem>>, vector<32x256xbf16>
    %cst = arith.constant dense<0.000000e+00> : vector<16x256xf32>
    %2 = tpu.matmul %0, %1, %cst {dimension_numbers = #tpu.dot_dimension_numbers<[1], [0], [0], [1], [0, 0, 1, 1], [], []>} : vector<16x32xbf16>, vector<32x256xbf16>, vector<16x256xf32> -> vector<16x256xf32>
    %c0_3 = arith.constant 0 : index
    %c0_4 = arith.constant 0 : index
    %3 = vector.load %arg4[%c0_3, %c0_4] : memref<1x256xf32, #tpu.memory_space<vmem>>, vector<1x256xf32>
    %4 = vector.broadcast %3 : vector<1x256xf32> to vector<16x256xf32>
    %5 = arith.addf %2, %4 : vector<16x256xf32>
    %6 = vector.extract_strided_slice %5 {offsets = [0, 0], sizes = [16, 128], strides = [1, 1]} : vector<16x256xf32> to vector<16x128xf32>
    %7 = vector.extract_strided_slice %5 {offsets = [0, 128], sizes = [16, 128], strides = [1, 1]} : vector<16x256xf32> to vector<16x128xf32>
    %8 = arith.negf %6 : vector<16x128xf32>
    %9 = math.exp %8 : vector<16x128xf32>
    %cst_5 = arith.constant 1.000000e+00 : f32
    %10 = vector.broadcast %cst_5 : f32 to vector<16x128xf32>
    %11 = arith.addf %10, %9 : vector<16x128xf32>
    %12 = arith.divf %10, %11 : vector<16x128xf32>
    %13 = arith.mulf %6, %12 : vector<16x128xf32>
    %14 = arith.mulf %13, %7 : vector<16x128xf32>
    %15 = arith.truncf %14 : vector<16x128xf32> to vector<16x128xbf16>
    %c0_6 = arith.constant 0 : index
    %c0_7 = arith.constant 0 : index
    %16 = vector.load %arg5[%c0_6, %c0_7] : memref<128x32xbf16, #tpu.memory_space<vmem>>, vector<128x32xbf16>
    %cst_8 = arith.constant dense<0.000000e+00> : vector<16x32xf32>
    %17 = tpu.matmul %15, %16, %cst_8 {dimension_numbers = #tpu.dot_dimension_numbers<[1], [0], [0], [1], [0, 0, 1, 1], [], []>} : vector<16x128xbf16>, vector<128x32xbf16>, vector<16x32xf32> -> vector<16x32xf32>
    %c0_i32 = arith.constant 0 : i32
    %18 = arith.cmpi eq, %arg1, %c0_i32 : i32
    %19 = arith.extui %18 : i1 to i32
    %c0_i32_9 = arith.constant 0 : i32
    %20 = arith.cmpi ne, %19, %c0_i32_9 : i32
    scf.if %20 {
      %c0_14 = arith.constant 0 : index
      %c0_15 = arith.constant 0 : index
      %27 = vector.load %arg8[%c0_14, %c0_15] : memref<16x32xf32, #tpu.memory_space<vmem>>, vector<16x32xf32>
      tpu.vector_store %arg8[%c0_14, %c0_15], %17 {strides = array<i32>} : memref<16x32xf32, #tpu.memory_space<vmem>>, vector<16x32xf32>,
    } else {
    }
    %c0_i32_10 = arith.constant 0 : i32
    %21 = arith.cmpi ne, %arg1, %c0_i32_10 : i32
    %22 = arith.extui %21 : i1 to i32
    %c0_i32_11 = arith.constant 0 : i32
    %23 = arith.cmpi ne, %22, %c0_i32_11 : i32
    scf.if %23 {
      %c0_14 = arith.constant 0 : index
      %c0_15 = arith.constant 0 : index
      %27 = vector.load %arg8[%c0_14, %c0_15] : memref<16x32xf32, #tpu.memory_space<vmem>>, vector<16x32xf32>
      %28 = arith.addf %27, %17 : vector<16x32xf32>
      %c0_16 = arith.constant 0 : index
      %c0_17 = arith.constant 0 : index
      %29 = vector.load %arg8[%c0_16, %c0_17] : memref<16x32xf32, #tpu.memory_space<vmem>>, vector<16x32xf32>
      tpu.vector_store %arg8[%c0_16, %c0_17], %28 {strides = array<i32>} : memref<16x32xf32, #tpu.memory_space<vmem>>, vector<16x32xf32>,
    } else {
    }
    %c0_i32_12 = arith.constant 0 : i32
    %24 = arith.cmpi eq, %arg1, %c0_i32_12 : i32
    %25 = arith.extui %24 : i1 to i32
    %c0_i32_13 = arith.constant 0 : i32
    %26 = arith.cmpi ne, %25, %c0_i32_13 : i32
    scf.if %26 {
      %c0_14 = arith.constant 0 : index
      %c0_15 = arith.constant 0 : index
      %27 = vector.load %arg8[%c0_14, %c0_15] : memref<16x32xf32, #tpu.memory_space<vmem>>, vector<16x32xf32>
      %c0_16 = arith.constant 0 : index
      %c0_17 = arith.constant 0 : index
      %28 = vector.load %arg6[%c0_16, %c0_17] : memref<1x32xf32, #tpu.memory_space<vmem>>, vector<1x32xf32>
      %29 = vector.broadcast %28 : vector<1x32xf32> to vector<16x32xf32>
      %30 = arith.addf %27, %29 : vector<16x32xf32>
      %c0_18 = arith.constant 0 : index
      %c0_19 = arith.constant 0 : index
      %31 = vector.load %arg7[%c0_18, %c0_19] : memref<16x32xf32, #tpu.memory_space<vmem>>, vector<16x32xf32>
      tpu.vector_store %arg7[%c0_18, %c0_19], %30 {strides = array<i32>} : memref<16x32xf32, #tpu.memory_space<vmem>>, vector<16x32xf32>,
    } else {
    }
    return
  }
  func.func @transform_0(%arg0: i32, %arg1: i32) -> (i32, i32) {
    %c0_i32 = arith.constant 0 : i32
    %c0_i32_0 = arith.constant 0 : i32
    return %arg0, %c0_i32 : i32, i32
  }
  func.func @transform_1(%arg0: i32, %arg1: i32) -> (i32, i32) {
    %c0_i32 = arith.constant 0 : i32
    %c0_i32_0 = arith.constant 0 : i32
    return %c0_i32, %arg1 : i32, i32
  }
  func.func @transform_2(%arg0: i32, %arg1: i32) -> (i32, i32) {
    %c0_i32 = arith.constant 0 : i32
    %c0_i32_0 = arith.constant 0 : i32
    return %c0_i32, %arg1 : i32, i32
  }
  func.func @transform_3(%arg0: i32, %arg1: i32) -> (i32, i32) {
    %c0_i32 = arith.constant 0 : i32
    %c0_i32_0 = arith.constant 0 : i32
    return %arg1, %c0_i32 : i32, i32
  }
  func.func @transform_4(%arg0: i32, %arg1: i32) -> (i32, i32) {
    %c0_i32 = arith.constant 0 : i32
    %c0_i32_0 = arith.constant 0 : i32
    %c0_i32_1 = arith.constant 0 : i32
    return %c0_i32, %c0_i32_0 : i32, i32
  }
  func.func @transform_5(%arg0: i32, %arg1: i32) -> (i32, i32) {
    %c0_i32 = arith.constant 0 : i32
    %c0_i32_0 = arith.constant 0 : i32
    return %arg0, %c0_i32 : i32, i32
  }
}

</mosaic_0001>

<bundles_post_ra>
// kernel: _ffn_pallas.1
= control target key start
LH: loop header
LB: loop body
LE: loop exit
PB: predicated region body
PF: predicated region fallthrough
CT: control target
= control target key end

     0   :  { %10 = vsyncpa [#allocation4], 0  ;;  %s697_s0 = inlined_call_operand.hbm [shape: bf16[16,32], index: 0, kind: input, shape index: {}]   ;;  %s698_s1 = inlined_call_operand.hbm [shape: bf16[32,256], index: 1, kind: input, shape index: {}]   ;;  %s699_s2 = inlined_call_operand.hbm [shape: f32[1,256], index: 2, kind: input, shape index: {}]   ;;  %s700_s3 = inlined_call_operand.hbm [shape: bf16[128,32], index: 3, kind: input, shape index: {}]   ;;  %s701_s4 = inlined_call_operand.hbm [shape: f32[1,32], index: 4, kind: input, shape index: {}]   ;;  %s702_s5 = inlined_call_operand.hbm [shape: f32[16,32], index: 5, kind: output, shape index: {}]  }
   0x1   :  { %11 = vsyncpa [#allocation7], 0 }
   0x2   :  { %12 = vsyncpa [#allocation10], 0 }
   0x3   :  { %13 = vsyncpa [#allocation5], 0  ;;  %s571_s18 = smov [#allocation6]   ;;  %s431_s22 = scalar_lea.hbm %s698_s1, 512 }
   0x4   :  { %s31_s19 = sshll.u32 %s571_s18, 4  ;;  %p432_p0 = scmp.ne.s32.totalorder %s698_s1, %s431_s22  ;;  %s32_s19 = int_to_ptr.vmem [resolvable:$true] %s31_s19 }
   0x5   :  { %p435_p1 = scmp.lt.u32.totalorder %s431_s22, %s698_s1 }
   0x7   :  { %p437_p2 = pnand %p435_p1, %p432_p0 }
   0x9   :  { %440 = shalt.err (!%p437_p2)
}
   0xa   :  { %s441_s27 = scalar_lea.vmem %s32_s19, 512  ;;  %p446_p4 = scmp.lt.s32.totalorder %s32_s19, %s32_s19 }
   0xb   :  { %p442_p3 = scmp.ne.s32.totalorder %s32_s19, %s441_s27  ;;  %p447_p5 = scmp.lt.s32.totalorder %s441_s27, %s441_s27 }
   0xd   :  { %p448_p6 = por %p447_p5, %p446_p4 }
   0xf   :  { %p449_p7 = pnand %p448_p6, %p442_p3 }
  0x11   :  { %452 = shalt.err (!%p449_p7)
}
  0x12   :  { %s572_s28 = smov 128   ;;  %s573_s29 = smov 8  }
  0x13   :  { %37 = dma.hbm_to_vmem [thread:$0]  %s698_s1, 512, %s32_s19, [#allocation7], %s572_s28, %s572_s28, %s573_s29  }
  0x14   :  { %s574_s7 = smov [#allocation9]   ;;  %s575_s9 = smov [#allocation3]  }
  0x15   :  { %s53_s8 = sshll.u32 %s574_s7, 4  ;;  %s19_s10 = sshll.u32 %s575_s9, 4  ;;  %s54_s8 = int_to_ptr.vmem [resolvable:$true] %s53_s8  ;;  %s20_s10 = int_to_ptr.vmem [resolvable:$true] %s19_s10 }
  0x16   :  { %s453_s13 = scalar_lea.hbm %s700_s3, 1024 }
  0x17   :  { %p454_p8 = scmp.ne.s32.totalorder %s700_s3, %s453_s13  ;;  %p457_p9 = scmp.lt.u32.totalorder %s453_s13, %s700_s3 }
  0x19   :  { %p459_p10 = pnand %p457_p9, %p454_p8 }
  0x1b   :  { %462 = shalt.err (!%p459_p10)
}
  0x1c   :  { %s463_s1 = scalar_lea.vmem %s54_s8, 1024  ;;  %p468_p12 = scmp.lt.s32.totalorder %s54_s8, %s54_s8 }
  0x1d   :  { %p464_p11 = scmp.ne.s32.totalorder %s54_s8, %s463_s1  ;;  %p469_p13 = scmp.lt.s32.totalorder %s463_s1, %s463_s1 }
  0x1f   :  { %p470_p0 = por %p469_p13, %p468_p12 }
  0x21   :  { %p471_p1 = pnand %p470_p0, %p464_p11 }
  0x23   :  { %474 = shalt.err (!%p471_p1)
}
  0x24   :  { %s576_s18 = smov 64   ;;  %s577_s19 = smov 4  }
  0x25   :  { %59 = dma.hbm_to_vmem [thread:$0]  %s700_s3, 1024, %s54_s8, [#allocation10], %s576_s18, %s576_s18, %s577_s19  }
  0x26   :  { %s475_s24 = scalar_lea.hbm %s697_s0, 128 }
  0x27   :  { %p476_p2 = scmp.ne.s32.totalorder %s697_s0, %s475_s24  ;;  %p479_p3 = scmp.lt.u32.totalorder %s475_s24, %s697_s0 }
  0x29   :  { %p481_p4 = pnand %p479_p3, %p476_p2 }
  0x2b   :  { %484 = shalt.err (!%p481_p4)
}
  0x2c   :  { %s485_s6 = scalar_lea.vmem %s20_s10, 128  ;;  %p490_p6 = scmp.lt.s32.totalorder %s20_s10, %s20_s10 }
  0x2d   :  { %p486_p5 = scmp.ne.s32.totalorder %s20_s10, %s485_s6  ;;  %p491_p7 = scmp.lt.s32.totalorder %s485_s6, %s485_s6 }
  0x2f   :  { %p492_p8 = por %p491_p7, %p490_p6 }
  0x31   :  { %p493_p9 = pnand %p492_p8, %p486_p5 }
  0x33   :  { %496 = shalt.err (!%p493_p9)
}
  0x34   :  { %25 = dma.hbm_to_vmem [thread:$0]  %s697_s0, 128, %s20_s10, [#allocation4], %s576_s18, %s576_s18, %s577_s19  }
  0x35   :  { %s578_s8 = smov [#allocation8]   ;;  %s579_s11 = smov [#allocation11]  }
  0x36   :  { %s44_s9 = sshll.u32 %s578_s8, 4  ;;  %s66_s12 = sshll.u32 %s579_s11, 4  ;;  %s45_s9 = int_to_ptr.vmem [resolvable:$true] %s44_s9  ;;  %s67_s12 = int_to_ptr.vmem [resolvable:$true] %s66_s12 }
  0x37   :  { %s497_s15 = scalar_lea.hbm %s699_s2, 32 }
  0x38   :  { %p498_p10 = scmp.ne.s32.totalorder %s699_s2, %s497_s15  ;;  %p501_p11 = scmp.lt.u32.totalorder %s497_s15, %s699_s2 }
  0x3a   :  { %p503_p12 = pnand %p501_p11, %p498_p10 }
  0x3c   :  { %506 = shalt.err (!%p503_p12)
}
  0x3d   :  { %s507_s0 = scalar_lea.vmem %s45_s9, 32  ;;  %p512_p0 = scmp.lt.s32.totalorder %s45_s9, %s45_s9 }
  0x3e   :  { %p508_p13 = scmp.ne.s32.totalorder %s45_s9, %s507_s0  ;;  %p513_p1 = scmp.lt.s32.totalorder %s507_s0, %s507_s0 }
  0x40   :  { %p514_p2 = por %p513_p1, %p512_p0 }
  0x42   :  { %p515_p3 = pnand %p514_p2, %p508_p13 }
  0x44   :  { %518 = shalt.err (!%p515_p3)
}
  0x45   :  { %47 = dma.hbm_to_vmem [thread:$0]  %s699_s2, 32, %s45_s9, [#allocation7]  }
  0x46   :  { %s519_s22 = scalar_lea.hbm %s701_s4, 16 }
  0x47   :  { %p520_p4 = scmp.ne.s32.totalorder %s701_s4, %s519_s22  ;;  %p523_p5 = scmp.lt.u32.totalorder %s519_s22, %s701_s4 }
  0x49   :  { %p525_p6 = pnand %p523_p5, %p520_p4 }
  0x4b   :  { %528 = shalt.err (!%p525_p6)
}
  0x4c   :  { %s529_s27 = scalar_lea.vmem %s67_s12, 16  ;;  %s533_s30 = scalar_lea.vmem %s67_s12, 32 }
  0x4d   :  { %p530_p7 = scmp.ne.s32.totalorder %s67_s12, %s529_s27  ;;  %p534_p8 = scmp.lt.s32.totalorder %s67_s12, %s67_s12 }
  0x4e   :  { %p535_p9 = scmp.lt.s32.totalorder %s533_s30, %s529_s27 }
  0x50   :  { %p536_p10 = por %p535_p9, %p534_p8 }
  0x52   :  { %p537_p11 = pnand %p536_p10, %p530_p7 }
  0x54   :  { %540 = shalt.err (!%p537_p11)
}
  0x55   :  { %69 = dma.hbm_to_vmem [thread:$0]  %s701_s4, 16, %s67_s12, [#allocation10]  }
  0x56   :  { %563 = dma.done.wait [#allocation4], 128  }
  0x57   :  { %564 = vsyncadd [#allocation4], 4294967168 }
  0x58   :  { %565 = dma.done.wait [#allocation7], 544  }
  0x59   :  { %566 = vsyncadd [#allocation7], 4294966752 }
  0x5a   :  { %567 = dma.done.wait [#allocation10], 1040  }
  0x5b   :  { %568 = vsyncadd [#allocation10], 4294966256  ;;  %v580_v0 = vmov 0   ;;  %v408_v1 = vld [vmem:[#allocation6 + $0x4] ss:$8 sps:$4 sm:$0xff]   ;;  %vm129_vm0 = vcmask 261120   ;;  %v94_v15 = vlaneseq }
  0x5c   :  { %165 = vmatprep.mubr.bf16.mxu0 %v580_v0  ;;  %v410_v2 = vld [vmem:[#allocation6] ss:$8 sps:$4 sm:$0xff]   ;;  %133 = vmatprep.subr.bf16.mxu0 %v408_v1  ;;  %v411_v3 = vld [vmem:[#allocation6 + $0x14] ss:$8 sps:$4 sm:$0xff]   ;;  %v413_v4 = vld [vmem:[#allocation6 + $0x10] ss:$8 sps:$4 sm:$0xff]  }
  0x5d   :  { %134 = vmatpush1.bf16.msra.mxu0 %v410_v2  ;;  %v414_v5 = vld [vmem:[#allocation3] sm:$0xff]   ;;  %v415_v6 = vld [vmem:[#allocation9] sm:$0xff]   ;;  %v581_v7 = vmov 0.0   ;;  %v416_v8 = vld [vmem:[#allocation9 + $0x8] sm:$0xff]   ;;  %vm582_vm1 = vmmov 0   ;;  %v95_v16 = vshrl.u32 %v94_v15, 7 }
  0x5e   :  { %135 = vmatprep.subr.bf16.mxu0 %v411_v3  ;;  %375 = vmatprep.subr.bf16.mxu1 %v581_v7  ;;  %v417_v9 = vld [vmem:[#allocation9 + $0x10] sm:$0xff]   ;;  %v418_v10 = vld [vmem:[#allocation9 + $0x18] sm:$0xff]   ;;  %v419_v11 = vld [vmem:[#allocation9 + $0x20] sm:$0xff]   ;;  %s583_s4 = smov [#allocation12]  }
  0x5f   :  { %376 = vmatpush3.bf16.msra.mxu1 %v415_v6  ;;  %v420_v12 = vld [vmem:[#allocation9 + $0x28] sm:$0xff]   ;;  %v421_v13 = vld [vmem:[#allocation9 + $0x30] sm:$0xff]   ;;  %v422_v14 = vld [vmem:[#allocation9 + $0x38] sm:$0xff]   ;;  %391 = vmatprep.mubr.msk.bf16.mxu1 %vm582_vm1, %v581_v7  ;;  %v96_v17 = vsub.s32 0, %v95_v16  ;;  %v100_v32 = vsub.s32 1, %v95_v16  ;;  %s335_s3 = sshll.u32 %s583_s4, 4  ;;  %s336_s3 = int_to_ptr.vmem [resolvable:$true] %s335_s3 }
  0x60   :  { %377 = vmatprep.subr.bf16.mxu1 %v581_v7  ;;  %v92_v18 = vld [vmem:[#allocation8] sm:$0x3]  ;;  %v365_v47 = vld [vmem:[#allocation11] ss:$0 sm:$0xff]  ;;  %s541_s7 = scalar_lea.vmem %s336_s3, 256  ;;  %p546_p13 = scmp.lt.s32.totalorder %s336_s3, %s336_s3 }
  0x61   :  { %136 = vmatpush1.bf16.msra.mxu0 %v413_v4  ;;  %v97_v19 = vrot.slane %v92_v18, %v96_v17  ;;  %v101_v33 = vrot.slane %v92_v18, %v100_v32  ;;  %p542_p12 = scmp.ne.s32.totalorder %s336_s3, %s541_s7  ;;  %p547_p0 = scmp.lt.s32.totalorder %s541_s7, %s541_s7 }
  0x63   :  { %378 = vmatpush3.bf16.msra.mxu1 %v416_v8  ;;  %p548_p1 = por %p547_p0, %p546_p13 }
  0x64   :  { %354 = vmatmul.mubr.msk.bf16.vlgmr.msra.gmra.mrb[0].mxu0 %vm129_vm0, %v414_v5  ;;  %379 = vmatprep.subr.bf16.mxu1 %v581_v7 }
  0x65   :  { %p549_p2 = pnand %p548_p1, %p542_p12 }
  0x67   :  { %380 = vmatpush3.bf16.msra.mxu1 %v417_v9 }
  0x68   :  { %381 = vmatprep.subr.bf16.mxu1 %v581_v7 }
  0x6b   :  { %382 = vmatpush3.bf16.msra.mxu1 %v418_v10 }
  0x6c   :  { %383 = vmatprep.subr.bf16.mxu1 %v581_v7 }
  0x6f   :  { %384 = vmatpush3.bf16.msra.mxu1 %v419_v11 }
  0x70   :  { %385 = vmatprep.subr.bf16.mxu1 %v581_v7 }
  0x73   :  { %386 = vmatpush3.bf16.msra.mxu1 %v420_v12 }
  0x74   :  { %387 = vmatprep.subr.bf16.mxu1 %v581_v7 }
  0x77   :  { %388 = vmatpush3.bf16.msra.mxu1 %v421_v13 }
  0x78   :  { %389 = vmatprep.subr.bf16.mxu1 %v581_v7 }
  0x7b   :  { %390 = vmatpush3.bf16.msra.mxu1 %v422_v14 }
 0x137   :  { %v167_v20 = vpop.f32.mrb[0].mxu0 }
 0x138   :  { %v168_v21 = vadd.f32 %v167_v20, %v97_v19  ;;  %v169_v22 = vpop.f32.mrb[1].mxu0 }
 0x139   :  { %v171_v23 = vpop.f32.mrb[2].mxu0  ;;  %v170_v36 = vadd.f32 %v169_v22, %v101_v33 }
 0x13a   :  { %v355_v24 = vmul.f32 -1.442695, %v168_v21  ;;  %v172_v25 = vadd.f32 %v171_v23, %v97_v19  ;;  %v173_v26 = vpop.f32.mrb[3].mxu0 }
 0x13b   :  { %v174_v40 = vadd.f32 %v173_v26, %v101_v33 }
 0x13c   :  { %423 = vpow2.f32 %v355_v24  ;;  %v356_v27 = vmul.f32 -1.442695, %v172_v25 }
 0x13e   :  { %425 = vpow2.f32 %v356_v27 }
 0x146   :  { %v424_v28 = vpop.eup %423 }
 0x147   :  { %v182_v29 = vadd.f32 1.0, %v424_v28 }
 0x148   :  { %v426_v30 = vpop.eup %425 }
 0x149   :  { %427 = vrcp.f32 %v182_v29  ;;  %v183_v31 = vadd.f32 1.0, %v426_v30 }
 0x14b   :  { %429 = vrcp.f32 %v183_v31 }
 0x153   :  { %v428_v34 = vpop.eup %427 }
 0x154   :  { %v188_v35 = vmul.f32 %v428_v34, %v168_v21 }
 0x155   :  { %v430_v37 = vpop.eup %429 }
 0x156   :  { %v190_v38 = vmul.f32 %v188_v35, %v170_v36  ;;  %v189_v39 = vmul.f32 %v430_v37, %v172_v25 }
 0x158   :  { %v191_v41 = vmul.f32 %v189_v39, %v174_v40 }
 0x15a   :  { %v192_v42 = vpack.c.bf16 %v191_v41, %v190_v38 }
 0x15c   :  { %392 = vmatmul.mubr.bf16.vlgmr.msra.gmra.mrb[0].mxu1 %v192_v42 }
 0x22f   :  { %v291_v43 = vpop.f32.mrb[0].mxu1 }
 0x230   :  { %302 = vst.msk [vmem:[#allocation2] sm:$0xff] %vm129_vm0, %v291_v43  ;;  %v393_v44 = vpop.f32.mrb[1].mxu1 }
 0x231   :  { %v294_v45 = vpop.f32.mrb[2].mxu1 }
 0x232   :  { %303 = vst.msk [vmem:[#allocation2 + $0x8] sm:$0xff] %vm129_vm0, %v294_v45  ;;  %v394_v46 = vpop.f32.mrb[3].mxu1 }
 0x237   :  { %v317_v48 = vld [vmem:[#allocation2] sm:$0xff] }
 0x238   :  { %v326_v49 = vadd.f32 %v365_v47, %v317_v48 }
 0x239   :  { %v318_v50 = vld [vmem:[#allocation2 + $0x8] sm:$0xff] }
 0x23a   :  { %v327_v51 = vadd.f32 %v365_v47, %v318_v50  ;;  %328 = vst.msk [vmem:[#allocation12] sm:$0xff] %vm129_vm0, %v326_v49 }
 0x23c   :  { %329 = vst.msk [vmem:[#allocation12 + $0x8] sm:$0xff] %vm129_vm0, %v327_v51 }
 0x23d   :  { %552 = shalt.err (!%p549_p2)
}
 0x23e   :  { %s553_s11 = scalar_lea.hbm %s702_s5, 256 }
 0x23f   :  { %p554_p3 = scmp.ne.s32.totalorder %s702_s5, %s553_s11  ;;  %p557_p4 = scmp.lt.u32.totalorder %s553_s11, %s702_s5 }
 0x241   :  { %p559_p5 = pnand %p557_p4, %p554_p3 }
 0x243   :  { %562 = shalt.err (!%p559_p5)
}
 0x244   :  { %341 = dma.vmem_to_hbm [thread:$0]  %s336_s3, 256, %s702_s5, [#allocation5], %s572_s28, %s572_s28, %s573_s29  }
 0x245   :  { %569 = dma.done.wait [#allocation5], 256  }
 0x246   :  { %570 = vsyncadd [#allocation5], 4294967040 }
 0x247   :  { %345 = vsyncpa [#allocation4], 1 }
 0x248   :  { %346 = vsyncpa [#allocation7], 1 }
 0x249   :  { %347 = vsyncpa [#allocation10], 1 }
 0x24a   :  { %348 = vsyncpa [#allocation5], 1 }

</bundles_post_ra>
